<compile_context>
chip_gen: v6e
topology: v6e:2x2x1
jax: 0.10.0
libtpu: 0.0.40
codegen_flags: <defaults>
</compile_context>

<pallas_src>
import jax
import jax.numpy as jnp
from jax.experimental import pallas as pl
from jax.experimental.pallas import tpu as pltpu


def _lora_kernel(x_ref, w_ref, bias_ref, b_ref, a_ref, o_ref, acc_ref, xb_ref):
    j = pl.program_id(1)          # output-column block
    l = pl.program_id(2)          # reduction step over d

    @pl.when(l == 0)
    def _init():
        # Fold the (f32) bias straight into the accumulator init.
        acc_ref[...] = jnp.zeros_like(acc_ref) + bias_ref[...]

    x = x_ref[...]                                                     # (tm, tk)

    # Frozen base path partial sum: x @ W^T with W in native (k, d) layout.
    acc_ref[...] += jax.lax.dot_general(
        x, w_ref[...],
        dimension_numbers=(((1,), (1,)), ((), ())),                    # trans_b form
        preferred_element_type=jnp.float32)                            # (tm, tn)

    # LoRA down-projection: computed only once per row-block (at j == 0); the
    # (tm, r_pad) scratch is reused for all other output-column blocks.
    @pl.when(jnp.logical_and(j == 0, l == 0))
    def _zero_xb():
        xb_ref[...] = jnp.zeros_like(xb_ref)

    @pl.when(j == 0)
    def _accum_xb():
        xb_ref[...] += jnp.dot(x, b_ref[...],
                               preferred_element_type=jnp.float32)     # (tm, r_pad)

    @pl.when(l == pl.num_programs(2) - 1)
    def _finalize():
        # LoRA up-projection; alpha/r already folded into A.
        lora = jnp.dot(xb_ref[...].astype(a_ref.dtype), a_ref[...],
                       preferred_element_type=jnp.float32)             # (tm, tn)
        o_ref[...] = (acc_ref[...] + lora).astype(o_ref.dtype)


def _choose_tk(d, tk_pref):
    """Pick a reduction tile that divides d exactly (lane-aligned when possible)."""
    tk = min(tk_pref, d)
    if d % tk == 0:
        return tk, False
    c = (tk // 128) * 128
    while c >= 128:
        if d % c == 0:
            return c, False
        c -= 128
    if d <= 2048:
        return d, False        # single reduction block; still VMEM-friendly
    return tk, True            # awkward large d: fall back to padding


def lora_linear_forward(x, w, bias, B, A, alpha, *, tm=512, tn=1024, tk=1024):
    """x: (..., d); w: (k, d) native nn.Linear layout; bias: (k,); B: (d, r); A: (r, k)."""
    orig_shape = x.shape
    d = orig_shape[-1]
    k = w.shape[0]
    r = B.shape[1]
    scaler = float(alpha) / float(r)

    x2 = x.reshape(-1, d)                                   # (M, d)
    M = x2.shape[0]
    dt = x2.dtype
    itemsize = jnp.dtype(dt).itemsize

    # ---- weight-side prep (hoist to parameter-load time in a real model) ----
    w_c = w if w.dtype == dt else w.astype(dt)              # native (k, d), NO transpose
    b_mat = B if B.dtype == dt else B.astype(dt)            # (d, r)
    a_scaled = (scaler * A).astype(dt)                      # (r, k), alpha/r folded in
    bias2 = bias.reshape(1, k).astype(jnp.float32)          # keep bias in f32

    # Lane-pad the rank so xb stores are unmasked and B/A tiles are lane-dense.
    r_pad = max(128, ((r + 127) // 128) * 128)
    if r_pad != r:
        b_mat = jnp.pad(b_mat, ((0, 0), (0, r_pad - r)))
        a_scaled = jnp.pad(a_scaled, ((0, r_pad - r), (0, 0)))

    # ---- tiling ----
    tm = min(tm, M)
    tn = min(tn, k)
    tk, need_pad = _choose_tk(d, tk)
    if need_pad:
        # TODO(synk): in-kernel masking of the d-tail would avoid this extra HBM pass.
        d_pad = pl.cdiv(d, tk) * tk - d
        x2 = jnp.pad(x2, ((0, 0), (0, d_pad)))
        w_c = jnp.pad(w_c, ((0, 0), (0, d_pad)))
        b_mat = jnp.pad(b_mat, ((0, d_pad), (0, 0)))
    d_full = x2.shape[1]

    grid = (pl.cdiv(M, tm), pl.cdiv(k, tn), d_full // tk)

    # ---- compiler params / cost estimate ----
    vmem_est = (2 * (tm * tk + tn * tk + tk * r_pad + r_pad * tn + tm * tn) * itemsize
                + 2 * tn * 4                      # f32 bias tiles (double-buffered)
                + tm * tn * 4 + tm * r_pad * 4)   # f32 scratch accumulators
    cp = dict(dimension_semantics=("parallel", "arbitrary", "arbitrary"))
    if vmem_est > 16 * 1024 * 1024:
        cp["vmem_limit_bytes"] = int(min(vmem_est * 5 // 4 + (1 << 20), 60 * 1024 * 1024))

    cost = pl.CostEstimate(
        flops=2 * M * d * k + 2 * M * d * r + 2 * M * r * k,
        transcendentals=0,
        bytes_accessed=int((x2.size + w_c.size + b_mat.size + a_scaled.size) * itemsize
                           + bias2.size * 4 + M * k * itemsize),
    )

    out = pl.pallas_call(
        _lora_kernel,
        out_shape=jax.ShapeDtypeStruct((M, k), dt),
        grid_spec=pltpu.PrefetchScalarGridSpec(
            num_scalar_prefetch=0,
            grid=grid,
            in_specs=[
                pl.BlockSpec((tm, tk), lambda i, j, l: (i, l)),      # x rows / d tile
                pl.BlockSpec((tn, tk), lambda i, j, l: (j, l)),      # W native (k, d) tile
                pl.BlockSpec((1, tn), lambda i, j, l: (0, j)),       # bias (f32)
                # B is only consumed at j == 0; pin its block index for j > 0 so the
                # pipeline does not re-stream it from HBM on every other column block.
                pl.BlockSpec((tk, r_pad),
                             lambda i, j, l: (jnp.where(j == 0, l, 0), 0)),
                pl.BlockSpec((r_pad, tn), lambda i, j, l: (0, j)),   # A (alpha/r folded)
            ],
            out_specs=pl.BlockSpec((tm, tn), lambda i, j, l: (i, j)),
            scratch_shapes=[
                pltpu.VMEM((tm, tn), jnp.float32),      # base-path f32 accumulator
                pltpu.VMEM((tm, r_pad), jnp.float32),   # x @ B accumulator (reused over j)
            ],
        ),
        compiler_params=pltpu.CompilerParams(**cp),
        cost_estimate=cost,
    )(x2, w_c, bias2, b_mat, a_scaled)

    return out.reshape(*orig_shape[:-1], k)


if __name__ == "__main__":
    key = jax.random.PRNGKey(0)

    # --- test 1: tiny shapes consistent with the module (batch=2, seq=8, d=32, k=32, r=4) ---
    batch, seq, d, k, r = 2, 8, 32, 32, 4
    alpha = 8.0
    kx, kw, kb, kB, kA, key = jax.random.split(key, 6)

    x = jax.random.normal(kx, (batch, seq, d), dtype=jnp.float32)
    w = jax.random.normal(kw, (k, d), dtype=jnp.float32) * 0.05      # nn.Linear weight (k, d)
    bias = jax.random.normal(kb, (k,), dtype=jnp.float32) * 0.05
    # Module init has B = zeros; use a small random B so the LoRA path is exercised.
    B = jax.random.normal(kB, (d, r), dtype=jnp.float32) * 0.02
    A = jax.random.normal(kA, (r, k), dtype=jnp.float32) * 0.02

    out = jax.block_until_ready(lora_linear_forward(x, w, bias, B, A, alpha))
    scaler = alpha / r
    ref = x @ w.T + bias + scaler * ((x @ B) @ A)
    assert out.shape == (batch, seq, k)
    assert jnp.allclose(out, ref, atol=1e-4, rtol=1e-4), "mismatch vs reference (test 1)"

    # --- test 2: multi-block grid so the j==0 xb reuse and masked tails are exercised ---
    M2, d2, k2, r2, alpha2 = 48, 384, 2304, 4, 8.0
    kx, kw, kb, kB, kA, key = jax.random.split(key, 6)
    x_b = jax.random.normal(kx, (M2, d2), dtype=jnp.float32)
    w_b = jax.random.normal(kw, (k2, d2), dtype=jnp.float32) * 0.05
    bias_b = jax.random.normal(kb, (k2,), dtype=jnp.float32) * 0.05
    B_b = jax.random.normal(kB, (d2, r2), dtype=jnp.float32) * 0.02
    A_b = jax.random.normal(kA, (r2, k2), dtype=jnp.float32) * 0.02

    out2 = jax.block_until_ready(
        lora_linear_forward(x_b, w_b, bias_b, B_b, A_b, alpha2, tm=16, tn=512, tk=128))
    hp = jax.lax.Precision.HIGHEST
    scaler2 = alpha2 / r2
    ref2 = (jnp.dot(x_b, w_b.T, precision=hp) + bias_b
            + scaler2 * jnp.dot(jnp.dot(x_b, B_b, precision=hp), A_b, precision=hp))
    assert out2.shape == (M2, k2)
    assert jnp.allclose(out2, ref2, atol=5e-3, rtol=5e-3), "mismatch vs reference (test 2)"

    print("KERNEL_OK")
</pallas_src>

<mosaic_0001>
module attributes {stable_mosaic.version = 11 : i64} {
  func.func @_lora_kernel(%arg0: i32, %arg1: i32, %arg2: i32, %arg3: memref<16x32xf32, #tpu.memory_space<vmem>>, %arg4: memref<32x32xf32, #tpu.memory_space<vmem>>, %arg5: memref<1x32xf32, #tpu.memory_space<vmem>>, %arg6: memref<32x128xf32, #tpu.memory_space<vmem>>, %arg7: memref<128x32xf32, #tpu.memory_space<vmem>>, %arg8: memref<16x32xf32, #tpu.memory_space<vmem>>, %arg9: memref<16x32xf32, #tpu.memory_space<vmem>>, %arg10: memref<16x128xf32, #tpu.memory_space<vmem>>) attributes {dimension_semantics = [#tpu.dimension_semantics<parallel>, #tpu.dimension_semantics<arbitrary>, #tpu.dimension_semantics<arbitrary>], iteration_bounds = array<i64: 1, 1, 1>, scalar_prefetch = 0 : i64, scratch_operands = 2 : i64, tpu.core_type = #tpu.core_type<tc>, window_params = [{transform_indices = @transform_0, window_bounds = array<i64: 16, 32>}, {transform_indices = @transform_1, window_bounds = array<i64: 32, 32>}, {transform_indices = @transform_2, window_bounds = array<i64: 1, 32>}, {transform_indices = @transform_3, window_bounds = array<i64: 32, 128>}, {transform_indices = @transform_4, window_bounds = array<i64: 128, 32>}, {transform_indices = @transform_5, window_bounds = array<i64: 16, 32>}]} {
    %c0_i32 = arith.constant 0 : i32
    %0 = arith.cmpi eq, %arg2, %c0_i32 : i32
    %1 = arith.extui %0 : i1 to i32
    %c0_i32_0 = arith.constant 0 : i32
    %2 = arith.cmpi ne, %1, %c0_i32_0 : i32
    scf.if %2 {
      %cst_15 = arith.constant 0.000000e+00 : f32
      %20 = vector.broadcast %cst_15 : f32 to vector<16x32xf32>
      %c0_16 = arith.constant 0 : index
      %c0_17 = arith.constant 0 : index
      %21 = vector.load %arg5[%c0_16, %c0_17] : memref<1x32xf32, #tpu.memory_space<vmem>>, vector<1x32xf32>
      %22 = vector.broadcast %21 : vector<1x32xf32> to vector<16x32xf32>
      %23 = arith.addf %20, %22 : vector<16x32xf32>
      %c0_18 = arith.constant 0 : index
      %c0_19 = arith.constant 0 : index
      %24 = vector.load %arg9[%c0_18, %c0_19] : memref<16x32xf32, #tpu.memory_space<vmem>>, vector<16x32xf32>
      tpu.vector_store %arg9[%c0_18, %c0_19], %23 {strides = array<i32>} : memref<16x32xf32, #tpu.memory_space<vmem>>, vector<16x32xf32>,
    } else {
    }
    %c0 = arith.constant 0 : index
    %c0_1 = arith.constant 0 : index
    %3 = vector.load %arg3[%c0, %c0_1] : memref<16x32xf32, #tpu.memory_space<vmem>>, vector<16x32xf32>
    %c0_2 = arith.constant 0 : index
    %c0_3 = arith.constant 0 : index
    %4 = vector.load %arg9[%c0_2, %c0_3] : memref<16x32xf32, #tpu.memory_space<vmem>>, vector<16x32xf32>
    %c0_4 = arith.constant 0 : index
    %c0_5 = arith.constant 0 : index
    %5 = vector.load %arg4[%c0_4, %c0_5] : memref<32x32xf32, #tpu.memory_space<vmem>>, vector<32x32xf32>
    %cst = arith.constant dense<0.000000e+00> : vector<16x32xf32>
    %6 = tpu.matmul %3, %5, %cst {dimension_numbers = #tpu.dot_dimension_numbers<[1], [1], [0], [0], [0, 0, 1, 0], [], []>} : vector<16x32xf32>, vector<32x32xf32>, vector<16x32xf32> -> vector<16x32xf32>
    %7 = arith.addf %4, %6 : vector<16x32xf32>
    %c0_6 = arith.constant 0 : index
    %c0_7 = arith.constant 0 : index
    %8 = vector.load %arg9[%c0_6, %c0_7] : memref<16x32xf32, #tpu.memory_space<vmem>>, vector<16x32xf32>
    tpu.vector_store %arg9[%c0_6, %c0_7], %7 {strides = array<i32>} : memref<16x32xf32, #tpu.memory_space<vmem>>, vector<16x32xf32>,
    %c0_i32_8 = arith.constant 0 : i32
    %9 = arith.cmpi eq, %arg1, %c0_i32_8 : i32
    %c0_i32_9 = arith.constant 0 : i32
    %10 = arith.cmpi eq, %arg2, %c0_i32_9 : i32
    %11 = arith.andi %9, %10 : i1
    %12 = arith.extui %11 : i1 to i32
    %c0_i32_10 = arith.constant 0 : i32
    %13 = arith.cmpi ne, %12, %c0_i32_10 : i32
    scf.if %13 {
      %cst_15 = arith.constant 0.000000e+00 : f32
      %20 = vector.broadcast %cst_15 : f32 to vector<16x128xf32>
      %c0_16 = arith.constant 0 : index
      %c0_17 = arith.constant 0 : index
      %21 = vector.load %arg10[%c0_16, %c0_17] : memref<16x128xf32, #tpu.memory_space<vmem>>, vector<16x128xf32>
      tpu.vector_store %arg10[%c0_16, %c0_17], %20 {strides = array<i32>} : memref<16x128xf32, #tpu.memory_space<vmem>>, vector<16x128xf32>,
    } else {
    }
    %c0_i32_11 = arith.constant 0 : i32
    %14 = arith.cmpi eq, %arg1, %c0_i32_11 : i32
    %15 = arith.extui %14 : i1 to i32
    %c0_i32_12 = arith.constant 0 : i32
    %16 = arith.cmpi ne, %15, %c0_i32_12 : i32
    scf.if %16 {
      %c0_15 = arith.constant 0 : index
      %c0_16 = arith.constant 0 : index
      %20 = vector.load %arg10[%c0_15, %c0_16] : memref<16x128xf32, #tpu.memory_space<vmem>>, vector<16x128xf32>
      %c0_17 = arith.constant 0 : index
      %c0_18 = arith.constant 0 : index
      %21 = vector.load %arg6[%c0_17, %c0_18] : memref<32x128xf32, #tpu.memory_space<vmem>>, vector<32x128xf32>
      %cst_19 = arith.constant dense<0.000000e+00> : vector<16x128xf32>
      %22 = tpu.matmul %3, %21, %cst_19 {dimension_numbers = #tpu.dot_dimension_numbers<[1], [0], [0], [1], [0, 0, 1, 1], [], []>} : vector<16x32xf32>, vector<32x128xf32>, vector<16x128xf32> -> vector<16x128xf32>
      %23 = arith.addf %20, %22 : vector<16x128xf32>
      %c0_20 = arith.constant 0 : index
      %c0_21 = arith.constant 0 : index
      %24 = vector.load %arg10[%c0_20, %c0_21] : memref<16x128xf32, #tpu.memory_space<vmem>>, vector<16x128xf32>
      tpu.vector_store %arg10[%c0_20, %c0_21], %23 {strides = array<i32>} : memref<16x128xf32, #tpu.memory_space<vmem>>, vector<16x128xf32>,
    } else {
    }
    %c0_i32_13 = arith.constant 0 : i32
    %17 = arith.cmpi eq, %arg2, %c0_i32_13 : i32
    %18 = arith.extui %17 : i1 to i32
    %c0_i32_14 = arith.constant 0 : i32
    %19 = arith.cmpi ne, %18, %c0_i32_14 : i32
    scf.if %19 {
      %c0_15 = arith.constant 0 : index
      %c0_16 = arith.constant 0 : index
      %20 = vector.load %arg10[%c0_15, %c0_16] : memref<16x128xf32, #tpu.memory_space<vmem>>, vector<16x128xf32>
      %c0_17 = arith.constant 0 : index
      %c0_18 = arith.constant 0 : index
      %21 = vector.load %arg7[%c0_17, %c0_18] : memref<128x32xf32, #tpu.memory_space<vmem>>, vector<128x32xf32>
      %cst_19 = arith.constant dense<0.000000e+00> : vector<16x32xf32>
      %22 = tpu.matmul %20, %21, %cst_19 {dimension_numbers = #tpu.dot_dimension_numbers<[1], [0], [0], [1], [0, 0, 1, 1], [], []>} : vector<16x128xf32>, vector<128x32xf32>, vector<16x32xf32> -> vector<16x32xf32>
      %c0_20 = arith.constant 0 : index
      %c0_21 = arith.constant 0 : index
      %23 = vector.load %arg9[%c0_20, %c0_21] : memref<16x32xf32, #tpu.memory_space<vmem>>, vector<16x32xf32>
      %24 = arith.addf %23, %22 : vector<16x32xf32>
      %c0_22 = arith.constant 0 : index
      %c0_23 = arith.constant 0 : index
      %25 = vector.load %arg8[%c0_22, %c0_23] : memref<16x32xf32, #tpu.memory_space<vmem>>, vector<16x32xf32>
      tpu.vector_store %arg8[%c0_22, %c0_23], %24 {strides = array<i32>} : memref<16x32xf32, #tpu.memory_space<vmem>>, vector<16x32xf32>,
    } else {
    }
    return
  }
  func.func @transform_0(%arg0: i32, %arg1: i32, %arg2: i32) -> (i32, i32) {
    %c0_i32 = arith.constant 0 : i32
    return %arg0, %arg2 : i32, i32
  }
  func.func @transform_1(%arg0: i32, %arg1: i32, %arg2: i32) -> (i32, i32) {
    %c0_i32 = arith.constant 0 : i32
    return %arg1, %arg2 : i32, i32
  }
  func.func @transform_2(%arg0: i32, %arg1: i32, %arg2: i32) -> (i32, i32) {
    %c0_i32 = arith.constant 0 : i32
    %c0_i32_0 = arith.constant 0 : i32
    return %c0_i32, %arg1 : i32, i32
  }
  func.func @transform_3(%arg0: i32, %arg1: i32, %arg2: i32) -> (i32, i32) {
    %c0_i32 = arith.constant 0 : i32
    %0 = arith.cmpi eq, %arg1, %c0_i32 : i32
    %c0_i32_0 = arith.constant 0 : i32
    %1 = arith.select %0, %arg2, %c0_i32_0 : i32
    %c0_i32_1 = arith.constant 0 : i32
    %c0_i32_2 = arith.constant 0 : i32
    return %1, %c0_i32_1 : i32, i32
  }
  func.func @transform_4(%arg0: i32, %arg1: i32, %arg2: i32) -> (i32, i32) {
    %c0_i32 = arith.constant 0 : i32
    %c0_i32_0 = arith.constant 0 : i32
    return %c0_i32, %arg1 : i32, i32
  }
  func.func @transform_5(%arg0: i32, %arg1: i32, %arg2: i32) -> (i32, i32) {
    %c0_i32 = arith.constant 0 : i32
    return %arg0, %arg1 : i32, i32
  }
}

</mosaic_0001>

<bundles_post_ra>
// kernel: tpu_custom_call.1
= control target key start
LH: loop header
LB: loop body
LE: loop exit
PB: predicated region body
PF: predicated region fallthrough
CT: control target
= control target key end

     0   :  { %vm60_vm0 = vcmask 261120   ;;  %s644_s0 = inlined_call_operand.vmem [shape: f32[16,32], index: 0, kind: input, shape index: {}]   ;;  %s645_s1 = inlined_call_operand.vmem [shape: f32[32,32], index: 1, kind: input, shape index: {}]   ;;  %s646_s2 = inlined_call_operand.vmem [shape: f32[1,32], index: 2, kind: input, shape index: {}]   ;;  %s647_s3 = inlined_call_operand.vmem [shape: f32[32,128], index: 3, kind: input, shape index: {}]   ;;  %s648_s4 = inlined_call_operand.vmem [shape: f32[128,32], index: 4, kind: input, shape index: {}]   ;;  %s649_s5 = inlined_call_operand.hbm [shape: f32[16,32], index: 5, kind: output, shape index: {}]  }
   0x1   :  { %v70_v0 = vld [vmem:[%s645_s1 + $0x18] sm:$0xff]  ;;  %v69_v1 = vld [vmem:[%s645_s1 + $0x10] sm:$0xff]  ;;  %v63_v2 = vld [vmem:[%s644_s0] sm:$0xff] }
   0x2   :  { %427 = vmatprep.subr.msk.mxu0 %vm60_vm0, %v70_v0  ;;  %435 = vmatprep.mubr.msk.f32.mxu0 %vm60_vm0, %v63_v2  ;;  %v284_v3 = vld [vmem:[%s648_s4 + $0x78] sm:$0xff]  ;;  %v283_v4 = vld [vmem:[%s648_s4 + $0x70] sm:$0xff]  ;;  %v68_v5 = vld [vmem:[%s645_s1 + $0x8] sm:$0xff] }
   0x3   :  { %428 = vmatpush3.xpose.msk.msra.mxu0 %vm60_vm0, %v70_v0  ;;  %449 = vmatprep.subr.mxu1 %v284_v3  ;;  %v282_v6 = vld [vmem:[%s648_s4 + $0x68] sm:$0xff]  ;;  %v388_v7 = vld [vmem:[%s646_s2] ss:$0 sm:$0xff] }
   0x4   :  { %429 = vmatprep.subr.msk.mxu0 %vm60_vm0, %v69_v1  ;;  %450 = vmatpush3.msra.mxu1 %v284_v3  ;;  %v281_v8 = vld [vmem:[%s648_s4 + $0x60] sm:$0xff]  ;;  %62 = vst.msk [vmem:[#allocation2 + $0x8] sm:$0xff] %vm60_vm0, %v388_v7  ;;  %61 = vst.msk [vmem:[#allocation2] sm:$0xff] %vm60_vm0, %v388_v7 }
   0x5   :  { %451 = vmatprep.subr.mxu1 %v283_v4 }
   0x6   :  { %452 = vmatpush3.msra.mxu1 %v283_v4 }
   0x7   :  { %430 = vmatpush3.xpose.msk.msra.mxu0 %vm60_vm0, %v69_v1 }
   0x8   :  { %431 = vmatprep.subr.msk.mxu0 %vm60_vm0, %v68_v5 }
   0x9   :  { %10 = vsyncpa [#allocation5], 0  ;;  %v67_v9 = vld [vmem:[%s645_s1] sm:$0xff]  ;;  %453 = vmatprep.subr.mxu1 %v282_v6  ;;  %v280_v10 = vld [vmem:[%s648_s4 + $0x58] sm:$0xff]  ;;  %s509_s17 = smov [#allocation4]  }
   0xa   :  { %454 = vmatpush3.msra.mxu1 %v282_v6  ;;  %v279_v11 = vld [vmem:[%s648_s4 + $0x50] sm:$0xff]  ;;  %v184_v12 = vld [vmem:[%s647_s3 + $0x18] sm:$0xff]  ;;  %v278_v13 = vld [vmem:[%s648_s4 + $0x48] sm:$0xff]  ;;  %s371_s1 = sshll.u32 %s509_s17, 4  ;;  %s372_s1 = int_to_ptr.vmem [resolvable:$true] %s371_s1 }
   0xb   :  { %432 = vmatpush3.xpose.msk.msra.mxu0 %vm60_vm0, %v68_v5  ;;  %455 = vmatprep.subr.mxu1 %v281_v8  ;;  %v64_v14 = vld [vmem:[%s644_s0 + $0x8] sm:$0xff]  ;;  %v183_v15 = vld [vmem:[%s647_s3 + $0x10] sm:$0xff]  ;;  %v277_v16 = vld [vmem:[%s648_s4 + $0x40] sm:$0xff]  ;;  %p492_p1 = scmp.lt.s32.totalorder %s372_s1, %s372_s1 }
   0xc   :  { %433 = vmatprep.subr.msk.mxu0 %vm60_vm0, %v67_v9  ;;  %456 = vmatpush3.msra.mxu1 %v281_v8  ;;  %v182_v17 = vld [vmem:[%s647_s3 + $0x8] sm:$0xff]  ;;  %v276_v18 = vld [vmem:[%s648_s4 + $0x38] sm:$0xff]  ;;  %v181_v19 = vld [vmem:[%s647_s3] sm:$0xff] }
   0xd   :  { %457 = vmatprep.subr.mxu1 %v280_v10  ;;  %v275_v20 = vld [vmem:[%s648_s4 + $0x30] sm:$0xff]  ;;  %v274_v21 = vld [vmem:[%s648_s4 + $0x28] sm:$0xff]  ;;  %v273_v22 = vld [vmem:[%s648_s4 + $0x20] sm:$0xff] }
   0xe   :  { %458 = vmatpush3.msra.mxu1 %v280_v10  ;;  %v272_v23 = vld [vmem:[%s648_s4 + $0x18] sm:$0xff]  ;;  %v271_v24 = vld [vmem:[%s648_s4 + $0x10] sm:$0xff]  ;;  %v270_v25 = vld [vmem:[%s648_s4 + $0x8] sm:$0xff] }
   0xf   :  { %434 = vmatpush3.xpose.msk.msra.mxu0 %vm60_vm0, %v67_v9  ;;  %459 = vmatprep.subr.mxu1 %v279_v11  ;;  %v269_v26 = vld [vmem:[%s648_s4] sm:$0xff]  ;;  %v66_v27 = vld [vmem:[#allocation2 + $0x8] sm:$0xff]  ;;  %s487_s4 = scalar_lea.vmem %s372_s1, 256 }
  0x10   :  { %438 = vmatprep.subr.mxu0 %v184_v12  ;;  %460 = vmatpush3.msra.mxu1 %v279_v11  ;;  %v65_v29 = vld [vmem:[#allocation2] sm:$0xff]  ;;  %p488_p0 = scmp.ne.s32.totalorder %s372_s1, %s487_s4  ;;  %p493_p2 = scmp.lt.s32.totalorder %s487_s4, %s487_s4 }
  0x11   :  { %461 = vmatprep.subr.mxu1 %v278_v13 }
  0x12   :  { %436 = vmatmul.mubr.msk.f32.vlgmr.msra.gmra.mxu0 %vm60_vm0, %v64_v14  ;;  %462 = vmatpush3.msra.mxu1 %v278_v13  ;;  %p494_p3 = por %p493_p2, %p492_p1 }
  0x13   :  { %439 = vmatpush3.msra.mxu0 %v184_v12  ;;  %446 = vmatprep.mubr.msk.f32.mxu0 %vm60_vm0, %v63_v2 }
  0x14   :  { %440 = vmatprep.subr.mxu0 %v183_v15  ;;  %463 = vmatprep.subr.mxu1 %v277_v16  ;;  %p495_p4 = pnand %p494_p3, %p488_p0 }
  0x15   :  { %441 = vmatpush3.msra.mxu0 %v183_v15  ;;  %464 = vmatpush3.msra.mxu1 %v277_v16 }
  0x16   :  { %442 = vmatprep.subr.mxu0 %v182_v17  ;;  %465 = vmatprep.subr.mxu1 %v276_v18 }
  0x17   :  { %443 = vmatpush3.msra.mxu0 %v182_v17  ;;  %466 = vmatpush3.msra.mxu1 %v276_v18 }
  0x18   :  { %444 = vmatprep.subr.mxu0 %v181_v19  ;;  %467 = vmatprep.subr.mxu1 %v275_v20 }
  0x19   :  { %445 = vmatpush3.msra.mxu0 %v181_v19  ;;  %468 = vmatpush3.msra.mxu1 %v275_v20 }
  0x1a   :  { %447 = vmatmul.mubr.msk.f32.vlgmr.msra.gmra.mxu0 %vm60_vm0, %v64_v14  ;;  %469 = vmatprep.subr.mxu1 %v274_v21 }
  0x1b   :  { %470 = vmatpush3.msra.mxu1 %v274_v21 }
  0x1c   :  { %471 = vmatprep.subr.mxu1 %v273_v22 }
  0x1d   :  { %472 = vmatpush3.msra.mxu1 %v273_v22 }
  0x1e   :  { %473 = vmatprep.subr.mxu1 %v272_v23 }
  0x1f   :  { %474 = vmatpush3.msra.mxu1 %v272_v23 }
  0x20   :  { %475 = vmatprep.subr.mxu1 %v271_v24 }
  0x21   :  { %476 = vmatpush3.msra.mxu1 %v271_v24 }
  0x22   :  { %477 = vmatprep.subr.mxu1 %v270_v25 }
  0x23   :  { %478 = vmatpush3.msra.mxu1 %v270_v25 }
  0x24   :  { %479 = vmatprep.subr.mxu1 %v269_v26 }
  0x25   :  { %480 = vmatpush3.msra.mxu1 %v269_v26 }
  0xd2   :  { %v437_v28 = vpop.f32.mrf.mxu0 }
  0xd3   :  { %v166_v30 = vadd.f32 %v437_v28, %v66_v27 }
  0xd4   :  { %v156_v31 = vpop.f32.mrf.mxu0 }
  0xd5   :  { %168 = vst.msk [vmem:[#allocation2 + $0x8] sm:$0xff] %vm60_vm0, %v166_v30  ;;  %v165_v32 = vadd.f32 %v156_v31, %v65_v29 }
  0xd7   :  { %167 = vst.msk [vmem:[#allocation2] sm:$0xff] %vm60_vm0, %v165_v32 }
  0xda   :  { %v448_v33 = vpop.f32.mrf.mxu0 }
  0xdc   :  { %v251_v34 = vpop.f32.mrf.mxu0  ;;  %v361_v36 = vld [vmem:[#allocation2 + $0x8] sm:$0xff] }
  0xdd   :  { %481 = vmatprep.mubr.f32.mxu1 %v251_v34 }
  0xde   :  { %482 = vmatmul.mubr.f32.vlgmr.msra.gmra.mxu1 %v448_v33  ;;  %v360_v39 = vld [vmem:[#allocation2] sm:$0xff] }
 0x19e   :  { %v483_v35 = vpop.f32.mrf.mxu1 }
 0x19f   :  { %v363_v37 = vadd.f32 %v483_v35, %v361_v36 }
 0x1a0   :  { %v351_v38 = vpop.f32.mrf.mxu1 }
 0x1a1   :  { %365 = vst.msk [vmem:[#allocation4 + $0x8] sm:$0xff] %vm60_vm0, %v363_v37  ;;  %v362_v40 = vadd.f32 %v360_v39, %v351_v38 }
 0x1a3   :  { %364 = vst.msk [vmem:[#allocation4] sm:$0xff] %vm60_vm0, %v362_v40 }
 0x1a4   :  { %498 = shalt.err (!%p495_p4)
}
 0x1a5   :  { %s510_s18 = smov 128   ;;  %s511_s19 = smov 8  }
 0x1a6   :  { %377 = dma.vmem_to_hbm [thread:$0]  %s372_s1, 256, %s649_s5, [#allocation5], %s510_s18, %s510_s18, %s511_s19  }
 0x1a7   :  { %507 = dma.done.wait [#allocation5], 256  }
 0x1a8   :  { %508 = vsyncadd [#allocation5], 4294967040 }
 0x1a9   :  { %381 = vsyncpa [#allocation5], 1 }

</bundles_post_ra>
